<compile_context>
chip_gen: v6e
topology: v6e:2x2x1
jax: 0.10.0
libtpu: 0.0.40
codegen_flags: <defaults>
</compile_context>

<pallas_src>
import jax
import jax.numpy as jnp
from jax.experimental import pallas as pl
from jax.experimental.pallas import tpu as pltpu


# ----------------------------------------------------------------------------
# Kernel body: straight VMEM tile copy.
# ----------------------------------------------------------------------------
def _copy_kernel(x_ref, o_ref):
    o_ref[...] = x_ref[...]


# ----------------------------------------------------------------------------
# Tiling helpers.
# ----------------------------------------------------------------------------
def _vmem_budget_bytes() -> int:
    """Generation-aware usable VMEM budget (v7x: 64 MiB phys, v5e/v6e: 128 MiB)."""
    try:
        phys = int(pltpu.get_tpu_info().vmem_capacity_bytes)
    except Exception:
        phys = 64 << 20  # conservative fallback: v7x per-core VMEM
    # Leave headroom for compiler scratch; cap so v5e/v6e don't go overboard.
    return min(int(phys * 0.7), 96 << 20)


def _lane_dense_2d(x: jax.Array) -> jax.Array:
    """2-D (rows, cols) view with cols a multiple of 128 whenever possible."""
    n = x.size
    if n % 128 == 0:
        base = n // 128
        d = 1
        for cand in range(1, min(64, base) + 1):  # cols = 128*d, capped at 8192
            if base % cand == 0:
                d = cand
        cols = 128 * d
        return x.reshape(n // cols, cols)
    # Fallback: trailing stores on the last lane block may be masked; correctness
    # is unaffected and this only triggers for sizes not divisible by 128.
    if x.ndim >= 2:
        return x.reshape(x.shape[0], -1)
    return x.reshape(1, -1)


# ----------------------------------------------------------------------------
# Materializing identity copy via Pallas (explicit opt-in).
# ----------------------------------------------------------------------------
def _pallas_copy(x: jax.Array) -> jax.Array:
    orig_shape = x.shape
    if x.size == 0:
        return x

    itemsize = jnp.dtype(x.dtype).itemsize
    sub = 8 * max(1, 4 // itemsize)  # sublane packing: 8 f32, 16 bf16, 32 int8/fp8

    vmem_limit = _vmem_budget_bytes()
    # Default pipelining keeps 2 input + 2 output buffers live simultaneously.
    tile_budget = min(8 << 20, vmem_limit // 4)

    x2 = _lane_dense_2d(x)
    m, k = x2.shape

    # --- lane-dim tile: full width if (min_rows x k) fits, else 128-aligned slab.
    min_rows = m if m < sub else sub
    if k * itemsize * min_rows <= tile_budget:
        bk = k
    else:
        max_bk = tile_budget // (min_rows * itemsize)
        bk = max(128, (max_bk // 128) * 128)
        bk = min(bk, k)

    # --- row-dim tile: as many sublane-aligned rows as fit the block budget.
    rows_fit = max(1, tile_budget // (bk * itemsize))
    if rows_fit >= m:
        bm = m
    else:
        bm = max(sub, (rows_fit // sub) * sub)
        bm = min(bm, m)

    # Keep >= 2 steps on the parallel row axis when the shape allows it, so both
    # v7x TensorCores get work (negligible cost on single-core v5e/v6e).
    if bm >= m and m >= 2 * sub:
        bm = max(sub, (((m + 1) // 2) // sub) * sub)

    grid = (pl.cdiv(m, bm), pl.cdiv(k, bk))

    out = pl.pallas_call(
        _copy_kernel,
        out_shape=jax.ShapeDtypeStruct((m, k), x2.dtype),
        grid_spec=pltpu.PrefetchScalarGridSpec(
            num_scalar_prefetch=0,
            grid=grid,
            in_specs=[pl.BlockSpec((bm, bk), lambda i, j: (i, j))],
            out_specs=pl.BlockSpec((bm, bk), lambda i, j: (i, j)),
        ),
        compiler_params=pltpu.CompilerParams(
            dimension_semantics=("parallel", "parallel"),
            vmem_limit_bytes=vmem_limit,
        ),
        cost_estimate=pl.CostEstimate(
            flops=0,
            transcendentals=0,
            bytes_accessed=2 * x.size * itemsize,
        ),
    )(x2)
    return out.reshape(orig_shape)


# ----------------------------------------------------------------------------
# Module wrapper: ExtractItem.forward
# ----------------------------------------------------------------------------
def extract_item(input, index: int, *, copy: bool = False,
                 min_copy_bytes: int = 1 << 20) -> jax.Array:
    """JAX equivalent of ExtractItem(index).forward(input).

    Default (copy=False) matches PyTorch's by-reference semantics exactly and
    does zero device work.  With copy=True, tensors larger than `min_copy_bytes`
    are materialized through the tuned Pallas identity-copy kernel; smaller ones
    bypass the kernel (launch overhead would dominate).
    """
    if isinstance(input, jax.Array):
        x = input
    elif isinstance(input, (list, tuple)):
        x = input[index]
    else:
        raise TypeError(
            f"[input] must be an array, list, or tuple, got {type(input).__name__}."
        )
    if not copy:
        return x
    if x.size * jnp.dtype(x.dtype).itemsize < min_copy_bytes:
        return x
    return _pallas_copy(x)


# ----------------------------------------------------------------------------
# Self-test
# ----------------------------------------------------------------------------
if __name__ == "__main__":
    key = jax.random.PRNGKey(0)
    k0, k1, k2 = jax.random.split(key, 3)

    # Small NCHW-style tensors; the sequence is the module's input.
    x0 = jax.random.normal(k0, (2, 4, 16, 16), dtype=jnp.float32)
    x1 = jax.random.normal(k1, (2, 4, 16, 16), dtype=jnp.float32)
    x2 = jax.random.normal(k2, (2, 4, 16, 16), dtype=jnp.float32)
    seq = [x0, x1, x2]
    index = 1

    # Module semantics: sequence path (zero-copy, like PyTorch by-reference).
    out = jax.block_until_ready(extract_item(seq, index))
    assert out.shape == seq[index].shape, out.shape
    assert bool(jnp.array_equal(out, seq[index])), "mismatch vs inputs[index]"

    # Single-tensor passthrough path.
    out_single = jax.block_until_ready(extract_item(x2, index))
    assert bool(jnp.array_equal(out_single, x2)), "mismatch on single-tensor path"

    # Exercise the Pallas identity-copy kernel once (explicit materialization;
    # min_copy_bytes=0 overrides the small-tensor bypass so the kernel runs).
    out_copy = jax.block_until_ready(
        extract_item(seq, index, copy=True, min_copy_bytes=0)
    )
    assert out_copy.shape == seq[index].shape
    assert bool(jnp.array_equal(out_copy, seq[index])), "mismatch on Pallas copy path"

    print("KERNEL_OK")
</pallas_src>

<mosaic_0001>
module attributes {stable_mosaic.version = 11 : i64} {
  func.func @_copy_kernel(%arg0: i32, %arg1: i32, %arg2: memref<1x2048xf32, #tpu.memory_space<vmem>>, %arg3: memref<1x2048xf32, #tpu.memory_space<vmem>>) attributes {dimension_semantics = [#tpu.dimension_semantics<parallel>, #tpu.dimension_semantics<parallel>], iteration_bounds = array<i64: 1, 1>, scalar_prefetch = 0 : i64, scratch_operands = 0 : i64, tpu.core_type = #tpu.core_type<tc>, window_params = [{transform_indices = @transform_0, window_bounds = array<i64: 1, 2048>}, {transform_indices = @transform_1, window_bounds = array<i64: 1, 2048>}]} {
    %c0 = arith.constant 0 : index
    %c0_0 = arith.constant 0 : index
    %0 = vector.load %arg2[%c0, %c0_0] : memref<1x2048xf32, #tpu.memory_space<vmem>>, vector<1x2048xf32>
    %c0_1 = arith.constant 0 : index
    %c0_2 = arith.constant 0 : index
    %1 = vector.load %arg3[%c0_1, %c0_2] : memref<1x2048xf32, #tpu.memory_space<vmem>>, vector<1x2048xf32>
    tpu.vector_store %arg3[%c0_1, %c0_2], %0 {strides = array<i32>} : memref<1x2048xf32, #tpu.memory_space<vmem>>, vector<1x2048xf32>,
    return
  }
  func.func @transform_0(%arg0: i32, %arg1: i32) -> (i32, i32) {
    %c0_i32 = arith.constant 0 : i32
    return %arg0, %arg1 : i32, i32
  }
  func.func @transform_1(%arg0: i32, %arg1: i32) -> (i32, i32) {
    %c0_i32 = arith.constant 0 : i32
    return %arg0, %arg1 : i32, i32
  }
}

</mosaic_0001>

<bundles_post_ra>
// kernel: tpu_custom_call.1
= control target key start
LH: loop header
LB: loop body
LE: loop exit
PB: predicated region body
PF: predicated region fallthrough
CT: control target
= control target key end

     0   :  { %6 = vsyncpa [#allocation3], 0  ;;  %s104_s0 = inlined_call_operand.hbm [shape: f32[1,2048], index: 0, kind: input, shape index: {}]   ;;  %s105_s1 = inlined_call_operand.hbm [shape: f32[1,2048], index: 1, kind: output, shape index: {}]  }
   0x1   :  { %7 = vsyncpa [#allocation4], 0  ;;  %s86_s6 = smov [#allocation2]  }
   0x2   :  { %s14_s7 = sshll.u32 %s86_s6, 4  ;;  %s15_s7 = int_to_ptr.vmem [resolvable:$true] %s14_s7 }
   0x3   :  { %s50_s8 = scalar_lea.vmem %s15_s7, 256  ;;  %p55_p1 = scmp.lt.s32.totalorder %s15_s7, %s15_s7 }
   0x4   :  { %p51_p0 = scmp.ne.s32.totalorder %s15_s7, %s50_s8  ;;  %p56_p2 = scmp.lt.s32.totalorder %s50_s8, %s50_s8 }
   0x6   :  { %p57_p3 = por %p56_p2, %p55_p1 }
   0x8   :  { %p58_p4 = pnand %p57_p3, %p51_p0 }
   0xa   :  { %61 = shalt.err (!%p58_p4)
}
   0xb   :  { %17 = dma.hbm_to_vmem [thread:$0]  %s104_s0, 256, %s15_s7, [#allocation3]  }
   0xc   :  { %82 = dma.done.wait [#allocation3], 256  }
   0xd   :  { %83 = vsyncadd [#allocation3], 4294967040  ;;  %s87_s11 = smov [#allocation5]   ;;  %v21_v0 = vld [vmem:[#allocation2] sm:$0xff]  ;;  %v22_v1 = vld [vmem:[#allocation2 + $0x8] sm:$0xff] }
   0xe   :  { %s31_s12 = sshll.u32 %s87_s11, 4  ;;  %23 = vst [vmem:[#allocation5] sm:$0xff] %v21_v0  ;;  %24 = vst [vmem:[#allocation5 + $0x8] sm:$0xff] %v22_v1  ;;  %s32_s12 = int_to_ptr.vmem [resolvable:$true] %s31_s12 }
   0xf   :  { %s62_s13 = scalar_lea.vmem %s32_s12, 256  ;;  %p67_p6 = scmp.lt.s32.totalorder %s32_s12, %s32_s12 }
  0x10   :  { %p63_p5 = scmp.ne.s32.totalorder %s32_s12, %s62_s13  ;;  %p68_p7 = scmp.lt.s32.totalorder %s62_s13, %s62_s13 }
  0x12   :  { %p69_p8 = por %p68_p7, %p67_p6 }
  0x14   :  { %p70_p9 = pnand %p69_p8, %p63_p5 }
  0x16   :  { %73 = shalt.err (!%p70_p9)
}
  0x17   :  { %34 = dma.vmem_to_hbm [thread:$0]  %s32_s12, 256, %s105_s1, [#allocation4]  }
  0x18   :  { %84 = dma.done.wait [#allocation4], 256  }
  0x19   :  { %85 = vsyncadd [#allocation4], 4294967040 }
  0x1a   :  { %38 = vsyncpa [#allocation3], 1 }
  0x1b   :  { %39 = vsyncpa [#allocation4], 1 }

</bundles_post_ra>
